<compile_context>
chip_gen: v7x
topology: tpu7x:2x2x1
jax: 0.10.0
libtpu: 0.0.40
codegen_flags: <defaults>
</compile_context>

<pallas_src>
import functools

import jax
import jax.numpy as jnp
import numpy as np
from jax.experimental import pallas as pl
from jax.experimental.pallas import tpu as pltpu


# ----------------------------------------------------------------------------
# Deterministic parameter construction (mirrors OcclusionFirstLayer.__init__)
# ----------------------------------------------------------------------------
def init_weights_bias(size_in: int, size_out: int, color_in: int):
    weights = np.zeros((size_out, size_in), dtype=np.float32)
    bias = np.zeros((size_out,), dtype=np.float32)
    block_size = (size_out - color_in) // 4
    for i in range(4):
        if i == 0 or i == 2:
            for j in range(block_size):
                weights[i * block_size + j, i] = 1.0
                bias[i * block_size + j] = -(j + 1)
        elif i == 1 or i == 3:
            for j in range(block_size):
                weights[i * block_size + j, i - 1] = -1.0
                weights[i * block_size + j, i] = -1.0
                bias[i * block_size + j] = j + 2
    for c in range(color_in):
        weights[-1 - c, -1 - c] = 1.0
    return jnp.asarray(weights), jnp.asarray(bias)


# ----------------------------------------------------------------------------
# Pallas kernel: out = W @ x + bias
# ----------------------------------------------------------------------------
def occlusion_first_layer_kernel(w_ref, b_ref, x_ref, o_ref):
    # w_ref: (size_out, size_in), b_ref: (size_out, 1), x_ref: (size_in, tn)
    acc = jnp.dot(w_ref[...], x_ref[...], preferred_element_type=jnp.float32)
    o_ref[...] = (acc + b_ref[...]).astype(o_ref.dtype)


def _choose_tn(n: int, tn_max: int) -> int:
    """Lane-tile size: large enough to amortize per-step pipeline overhead,
    small enough to keep >= ~4 grid steps for large N (megacore sharding)."""
    if n <= 512:
        # Single block spanning the full lane extent (always a legal BlockSpec,
        # even when n is not a multiple of 128).
        return n
    quarter = pl.cdiv(n, 4)
    return max(128, min(tn_max, 128 * pl.cdiv(quarter, 128)))


@functools.partial(jax.jit, static_argnames=("tn_max",))
def occlusion_first_layer(weights, bias, x, *, tn_max: int = 8192):
    """out = weights @ x + bias via a Pallas TPU kernel.

    Accepts x of shape (size_in,) (PyTorch forward semantics) or (size_in, N)
    treating each column as an independent input vector.
    """
    size_out, size_in = weights.shape
    x2 = x if x.ndim == 2 else x.reshape(size_in, 1)
    n = x2.shape[1]
    tn = _choose_tn(n, tn_max)
    bias_col = bias.reshape(size_out, 1)

    out = pl.pallas_call(
        occlusion_first_layer_kernel,
        out_shape=jax.ShapeDtypeStruct((size_out, n), x2.dtype),
        grid_spec=pltpu.PrefetchScalarGridSpec(
            num_scalar_prefetch=0,
            grid=(pl.cdiv(n, tn),),
            in_specs=[
                # Full weight matrix, resident across all grid steps.
                pl.BlockSpec((size_out, size_in), lambda j: (0, 0)),
                # Bias as a (size_out, 1) column; broadcast on the VPU in-kernel.
                pl.BlockSpec((size_out, 1), lambda j: (0, 0)),
                # Column tile of the input samples (lane axis = samples).
                pl.BlockSpec((size_in, tn), lambda j: (0, j)),
            ],
            out_specs=pl.BlockSpec((size_out, tn), lambda j: (0, j)),
        ),
        compiler_params=pltpu.CompilerParams(
            dimension_semantics=("parallel",),
        ),
        cost_estimate=pl.CostEstimate(
            flops=2 * size_out * size_in * n,
            transcendentals=0,
            bytes_accessed=4 * (size_in * n + size_out * n
                                + size_out * size_in + size_out),
        ),
    )(weights, bias_col, x2)
    return out if x.ndim == 2 else out[:, 0]


if __name__ == "__main__":
    # Small shapes consistent with the module:
    #   size_in = 8 input features, color_in = 3 color channels,
    #   block_size = 4  =>  size_out = 4 * 4 + 3 = 19.
    size_in, color_in = 8, 3
    block_size = 4
    size_out = 4 * block_size + color_in  # 19

    weights, bias = init_weights_bias(size_in, size_out, color_in)

    key = jax.random.PRNGKey(0)
    k1, k2, k3 = jax.random.split(key, 3)

    # 1) Small batch of column vectors (single-block path).
    x_small = jax.random.normal(k1, (size_in, 8), dtype=jnp.float32)
    out_small = jax.block_until_ready(occlusion_first_layer(weights, bias, x_small))
    ref_small = weights @ x_small + bias[:, None]
    np.testing.assert_allclose(np.asarray(out_small), np.asarray(ref_small),
                               rtol=1e-6, atol=1e-6)

    # 2) Ragged N (not a multiple of the tile): exercises the tiled path with a
    #    masked trailing block and no pad/slice ops in the wrapper.
    x_ragged = jax.random.normal(k2, (size_in, 650), dtype=jnp.float32)
    out_ragged = jax.block_until_ready(occlusion_first_layer(weights, bias, x_ragged))
    ref_ragged = weights @ x_ragged + bias[:, None]
    np.testing.assert_allclose(np.asarray(out_ragged), np.asarray(ref_ragged),
                               rtol=1e-6, atol=1e-6)

    # 3) 1-D input: exact PyTorch forward semantics.
    x_vec = jax.random.normal(k3, (size_in,), dtype=jnp.float32)
    out_vec = jax.block_until_ready(occlusion_first_layer(weights, bias, x_vec))
    ref_vec = weights @ x_vec + bias
    np.testing.assert_allclose(np.asarray(out_vec), np.asarray(ref_vec),
                               rtol=1e-6, atol=1e-6)

    print("KERNEL_OK")
</pallas_src>

<mosaic_0001>
module attributes {stable_mosaic.version = 11 : i64} {
  func.func @occlusion_first_layer_kernel(%arg0: i32, %arg1: memref<19x8xf32, #tpu.memory_space<vmem>>, %arg2: memref<19x1xf32, #tpu.memory_space<vmem>>, %arg3: memref<8x8xf32, #tpu.memory_space<vmem>>, %arg4: memref<19x8xf32, #tpu.memory_space<vmem>>) attributes {dimension_semantics = [#tpu.dimension_semantics<parallel>], iteration_bounds = array<i64: 1>, scalar_prefetch = 0 : i64, scratch_operands = 0 : i64, tpu.core_type = #tpu.core_type<tc>, window_params = [{pipeline_mode = #tpu.pipeline_mode<synchronous>, transform_indices = @transform_0, window_bounds = array<i64: 19, 8>}, {pipeline_mode = #tpu.pipeline_mode<synchronous>, transform_indices = @transform_1, window_bounds = array<i64: 19, 1>}, {transform_indices = @transform_2, window_bounds = array<i64: 8, 8>}, {transform_indices = @transform_3, window_bounds = array<i64: 19, 8>}]} {
    %c0 = arith.constant 0 : index
    %c0_0 = arith.constant 0 : index
    %0 = vector.load %arg1[%c0, %c0_0] : memref<19x8xf32, #tpu.memory_space<vmem>>, vector<19x8xf32>
    %c0_1 = arith.constant 0 : index
    %c0_2 = arith.constant 0 : index
    %1 = vector.load %arg3[%c0_1, %c0_2] : memref<8x8xf32, #tpu.memory_space<vmem>>, vector<8x8xf32>
    %cst = arith.constant dense<0.000000e+00> : vector<19x8xf32>
    %2 = tpu.matmul %0, %1, %cst {dimension_numbers = #tpu.dot_dimension_numbers<[1], [0], [0], [1], [0, 0, 1, 1], [], []>} : vector<19x8xf32>, vector<8x8xf32>, vector<19x8xf32> -> vector<19x8xf32>
    %c0_3 = arith.constant 0 : index
    %c0_4 = arith.constant 0 : index
    %3 = vector.load %arg2[%c0_3, %c0_4] : memref<19x1xf32, #tpu.memory_space<vmem>>, vector<19x1xf32>
    %4 = vector.broadcast %3 : vector<19x1xf32> to vector<19x8xf32>
    %5 = arith.addf %2, %4 : vector<19x8xf32>
    %c0_5 = arith.constant 0 : index
    %c0_6 = arith.constant 0 : index
    %6 = vector.load %arg4[%c0_5, %c0_6] : memref<19x8xf32, #tpu.memory_space<vmem>>, vector<19x8xf32>
    tpu.vector_store %arg4[%c0_5, %c0_6], %5 {strides = array<i32>} : memref<19x8xf32, #tpu.memory_space<vmem>>, vector<19x8xf32>,
    return
  }
  func.func @transform_0(%arg0: i32) -> (i32, i32) {
    %c0_i32 = arith.constant 0 : i32
    %c0_i32_0 = arith.constant 0 : i32
    %c0_i32_1 = arith.constant 0 : i32
    return %c0_i32, %c0_i32_0 : i32, i32
  }
  func.func @transform_1(%arg0: i32) -> (i32, i32) {
    %c0_i32 = arith.constant 0 : i32
    %c0_i32_0 = arith.constant 0 : i32
    %c0_i32_1 = arith.constant 0 : i32
    return %c0_i32, %c0_i32_0 : i32, i32
  }
  func.func @transform_2(%arg0: i32) -> (i32, i32) {
    %c0_i32 = arith.constant 0 : i32
    %c0_i32_0 = arith.constant 0 : i32
    return %c0_i32, %arg0 : i32, i32
  }
  func.func @transform_3(%arg0: i32) -> (i32, i32) {
    %c0_i32 = arith.constant 0 : i32
    %c0_i32_0 = arith.constant 0 : i32
    return %c0_i32, %arg0 : i32, i32
  }
}

</mosaic_0001>

<bundles_post_ra>
// kernel: occlusion_first_layer.1
= control target key start
LH: loop header
LB: loop body
LE: loop exit
PB: predicated region body
PF: predicated region fallthrough
CT: control target
= control target key end

     0   :  { %v159_v0 = vmov 0.0   ;;  %vm36_vm0 = vcmask 64512   ;;  %vm160_vm1 = vmmov 0   ;;  %v161_v7 = vmov 0   ;;  %s217_s2 = inlined_call_operand.vmem [shape: f32[8,8], index: 2, kind: input, shape index: {}]   ;;  %s218_s0 = inlined_call_operand.vmem [shape: f32[19,8], index: 0, kind: input, shape index: {}]   ;;  %s219_s1 = inlined_call_operand.vmem [shape: f32[19,1], index: 1, kind: input, shape index: {}]   ;;  %s220_s3 = inlined_call_operand.vmem [shape: f32[19,8], index: 3, kind: output, shape index: {}]  }
   0x1   :  { %141 = vmatprep.subr.mxu0 %v159_v0  ;;  %152 = vmatprep.subr.mxu1 %v159_v0  ;;  %v17_v1 = vld [vmem:[%s217_s2] sm:$0xff]  ;;  %v15_v3 = vld [vmem:[%s218_s0 + $0x8] sm:$0xff]  ;;  %v20_v5 = vld [vmem:[%s219_s1 + $0x10] sm:$0x7]  ;;  %vm128_vm2 = vcmask 59392  }
   0x2   :  { %v14_v2 = vld [vmem:[%s218_s0] sm:$0xff]  ;;  %142 = vmatpush3.msra.mxu0 %v17_v1  ;;  %153 = vmatpush3.msra.mxu1 %v17_v1  ;;  %v16_v6 = vld [vmem:[%s218_s0 + $0x10] sm:$0x7]  ;;  %v19_v8 = vld [vmem:[%s219_s1 + $0x8] sm:$0xff] }
   0x3   :  { %143 = vmatprep.mubr.msk.f32.mxu0 %vm160_vm1, %v159_v0  ;;  %146 = vmatprep.mubr.msk.f32.mxu1 %vm160_vm1, %v159_v0  ;;  %v18_v4 = vld [vmem:[%s219_s1] sm:$0xff] }
   0x4   :  { %144 = vmatmul.mubr.msk.f32.vlgmr.msra.gmra.mrb[0].mxu0 %vm36_vm0, %v14_v2  ;;  %147 = vmatmul.mubr.msk.f32.vlgmr.msra.gmra.mrb[0].mxu1 %vm36_vm0, %v15_v3 }
   0x5   :  { %149 = vmatprep.mubr.msk.f32.mxu1 %vm160_vm1, %v159_v0  ;;  %157 = vset.pattern.permute.xlu0 %v161_v7 }
   0x6   :  { %23 = vperm.xlu0 %157, %v18_v4   ;;  %158 = vset.pattern.permute.xlu1 %v161_v7 }
   0x7   :  { %33 = vperm.xlu1 %158, %v20_v5  }
   0x8   :  { %150 = vmatmul.mubr.msk.f32.gmra.mrb[2].mxu1 %vm36_vm0, %v16_v6 }
   0xa   :  { %28 = vperm.xlu0 %157, %v19_v8  }
  0x85   :  { %v24_v9 = vpop.permute.xlu0 %23 }
  0x86   :  { %v34_v17 = vpop.permute.xlu1 %33 }
  0x89   :  { %v29_v10 = vpop.permute.xlu0 %28 }
  0xd7   :  { %v112_v11 = vpop.f32.mrb[0].mxu0  ;;  %v117_v12 = vpop.f32.mrb[0].mxu1 }
  0xd8   :  { %v113_v13 = vadd.f32 %v112_v11, %v24_v9  ;;  %v118_v14 = vadd.f32 %v117_v12, %v29_v10  ;;  %v148_v15 = vpop.f32.mrb[1].mxu1  ;;  %v145_v16 = vpop.f32.mrb[1].mxu0 }
  0xda   :  { %126 = vst.msk [vmem:[%s220_s3] sm:$0xff] %vm36_vm0, %v113_v13  ;;  %127 = vst.msk [vmem:[%s220_s3 + $0x8] sm:$0xff] %vm36_vm0, %v118_v14 }
  0xdb   :  { %v122_v18 = vpop.f32.mrb[2].mxu1 }
  0xdc   :  { %v123_v19 = vadd.f32 %v122_v18, %v34_v17  ;;  %v151_v20 = vpop.f32.mrb[3].mxu1 }
  0xde   :  { %129 = vst.msk [vmem:[%s220_s3 + $0x10] sm:$0x7] %vm128_vm2, %v123_v19 }

</bundles_post_ra>
